<compile_context>
chip_gen: v5e
topology: v5e:2x2
jax: 0.10.0
libtpu: 0.0.40
codegen_flags: <defaults>
</compile_context>

<pallas_src>
import functools

import jax
import jax.numpy as jnp
from jax.experimental import pallas as pl
from jax.experimental.pallas import tpu as pltpu


# --------------------------------------------------------------------------
# Kernel bodies
# --------------------------------------------------------------------------
def _mlp_q(x_ref, w1_ref, b1_ref, w2_ref, b2_ref, w3_ref, b3_ref):
    """Shared MLP body -> f32 (tb, pad_n) Q slab (padded lanes are garbage-free zeros + b3 pad=0)."""
    x = x_ref[...]                       # (tb, n_obs) f32
    w1 = w1_ref[...]                     # (n_obs, H)  f32 (tiny)
    n_obs = x.shape[1]

    # Layer 1: K = n_obs (~4) is far too shallow for the MXU -> VPU FMAs on
    # already-resident vregs. Bias is folded into the k=0 term (no explicit
    # broadcast_to + extra add).
    h1 = x[:, 0:1] * w1[0:1, :] + b1_ref[...]          # (tb, H) f32
    for k in range(1, n_obs):                           # static, tiny trip count
        h1 = h1 + x[:, k:k + 1] * w1[k:k + 1, :]
    h1 = jnp.maximum(h1, 0.0)

    # Layer 2: MXU matmul, bf16 operands, f32 accumulation; activations f32.
    h2 = jnp.dot(h1.astype(w2_ref.dtype), w2_ref[...],
                 preferred_element_type=jnp.float32) + b2_ref[...]
    h2 = jnp.maximum(h2, 0.0)

    # Layer 3: lane-dense (128-padded) output columns.
    return jnp.dot(h2.astype(w3_ref.dtype), w3_ref[...],
                   preferred_element_type=jnp.float32) + b3_ref[...]


def dqn_q_kernel(x_ref, w1_ref, b1_ref, w2_ref, b2_ref, w3_ref, b3_ref, o_ref):
    """Q-value kernel: unmasked lane-dense store, bf16 writeback."""
    q = _mlp_q(x_ref, w1_ref, b1_ref, w2_ref, b2_ref, w3_ref, b3_ref)
    o_ref[...] = q.astype(o_ref.dtype)


def dqn_argmax_kernel(x_ref, w1_ref, b1_ref, w2_ref, b2_ref, w3_ref, b3_ref,
                      a_ref, *, n_actions):
    """Fused greedy-action kernel: argmax over the real action lanes, (tb,1) int32 out."""
    q = _mlp_q(x_ref, w1_ref, b1_ref, w2_ref, b2_ref, w3_ref, b3_ref)
    lane = jax.lax.broadcasted_iota(jnp.int32, q.shape, 1)
    q_m = jnp.where(lane < n_actions, q, -jnp.inf)
    m = jnp.max(q_m, axis=-1, keepdims=True)
    idx = jnp.where(q_m == m, lane, q.shape[1])          # first-max tie-break
    a_ref[...] = jnp.min(idx, axis=-1, keepdims=True).astype(jnp.int32)


# --------------------------------------------------------------------------
# Wrappers
# --------------------------------------------------------------------------
_LANE = 128


def _round_up(v, m):
    return ((v + m - 1) // m) * m


def _choose_tile(batch, max_tile=1024):
    """Big tiles (few grid steps); >=2 steps when B>16 so v7x's 2nd TC has work."""
    if batch <= 16:
        tb = max(8, _round_up(batch, 8))
    else:
        tb = min(max_tile, _round_up(pl.cdiv(batch, 2), 8))
    return tb, _round_up(batch, tb)


def _prepare_params(params):
    """Cast/pad weights once: bf16 MXU-facing weights, 128-lane-padded layer 3."""
    w1, b1 = params["w1"], params["b1"]
    w2, b2 = params["w2"], params["b2"]
    w3, b3 = params["w3"], params["b3"]
    hidden = w1.shape[1]
    n_actions = w3.shape[1]
    pad_n = _round_up(max(n_actions, 1), _LANE)

    w3_p = jnp.zeros((hidden, pad_n), jnp.bfloat16).at[:, :n_actions].set(
        w3.astype(jnp.bfloat16))
    b3_p = jnp.zeros((1, pad_n), jnp.float32).at[:, :n_actions].set(
        b3.astype(jnp.float32))
    return (w1.astype(jnp.float32), b1.astype(jnp.float32),
            w2.astype(jnp.bfloat16), b2.astype(jnp.float32),
            w3_p, b3_p, hidden, n_actions, pad_n)


def _common_specs(tb, n_obs, hidden, pad_n):
    return [
        pl.BlockSpec((tb, n_obs), lambda i: (i, 0)),        # x: per-tile
        pl.BlockSpec((n_obs, hidden), lambda i: (0, 0)),    # W1: VMEM-resident
        pl.BlockSpec((1, hidden), lambda i: (0, 0)),        # b1
        pl.BlockSpec((hidden, hidden), lambda i: (0, 0)),   # W2
        pl.BlockSpec((1, hidden), lambda i: (0, 0)),        # b2
        pl.BlockSpec((hidden, pad_n), lambda i: (0, 0)),    # W3 (lane-padded)
        pl.BlockSpec((1, pad_n), lambda i: (0, 0)),         # b3 (lane-padded)
    ]


def _pad_batch(x, b_pad):
    B = x.shape[0]
    x = x.astype(jnp.float32)
    if b_pad != B:
        x = jnp.pad(x, ((0, b_pad - B), (0, 0)))
    return x


def dqn_cartpole_forward(x, params, *, max_tile=1024):
    """x: (B, n_obs) float32 -> (B, n_actions) float32 Q-values."""
    B, n_obs = x.shape
    (w1_f, b1_f, w2_b, b2_f, w3_p, b3_p,
     hidden, n_actions, pad_n) = _prepare_params(params)
    tb, b_pad = _choose_tile(B, max_tile)
    x_p = _pad_batch(x, b_pad)

    out = pl.pallas_call(
        dqn_q_kernel,
        out_shape=jax.ShapeDtypeStruct((b_pad, pad_n), jnp.bfloat16),
        grid=(b_pad // tb,),
        in_specs=_common_specs(tb, n_obs, hidden, pad_n),
        out_specs=pl.BlockSpec((tb, pad_n), lambda i: (i, 0)),
        compiler_params=pltpu.CompilerParams(
            dimension_semantics=("parallel",),   # megacore-shard batch on v7x
        ),
    )(x_p, w1_f, b1_f, w2_b, b2_f, w3_p, b3_p)

    # Slice touches the (half-size) bf16 slab only; consumers that can handle
    # the padded slab directly should take `out` as-is.
    return out[:B, :n_actions].astype(jnp.float32)


def dqn_cartpole_select_action(x, params, *, max_tile=1024):
    """x: (B, n_obs) -> (B,) int32 greedy actions, single fused pallas_call."""
    B, n_obs = x.shape
    (w1_f, b1_f, w2_b, b2_f, w3_p, b3_p,
     hidden, n_actions, pad_n) = _prepare_params(params)
    tb, b_pad = _choose_tile(B, max_tile)
    x_p = _pad_batch(x, b_pad)

    act = pl.pallas_call(
        functools.partial(dqn_argmax_kernel, n_actions=n_actions),
        out_shape=jax.ShapeDtypeStruct((b_pad, 1), jnp.int32),
        grid=(b_pad // tb,),
        in_specs=_common_specs(tb, n_obs, hidden, pad_n),
        out_specs=pl.BlockSpec((tb, 1), lambda i: (i, 0)),
        compiler_params=pltpu.CompilerParams(
            dimension_semantics=("parallel",),
        ),
    )(x_p, w1_f, b1_f, w2_b, b2_f, w3_p, b3_p)

    return act[:B, 0]


# --------------------------------------------------------------------------
# Reference + init
# --------------------------------------------------------------------------
def init_params(key, n_observations, n_actions, hidden=128):
    """PyTorch-like uniform fan_in init; W stored as (in, out)."""
    def linear_init(k, fan_in, fan_out):
        kw, kb = jax.random.split(k)
        bound = 1.0 / jnp.sqrt(jnp.float32(fan_in))
        w = jax.random.uniform(kw, (fan_in, fan_out), jnp.float32, -bound, bound)
        b = jax.random.uniform(kb, (1, fan_out), jnp.float32, -bound, bound)
        return w, b

    k1, k2, k3 = jax.random.split(key, 3)
    w1, b1 = linear_init(k1, n_observations, hidden)
    w2, b2 = linear_init(k2, hidden, hidden)
    w3, b3 = linear_init(k3, hidden, n_actions)
    return {"w1": w1, "b1": b1, "w2": w2, "b2": b2, "w3": w3, "b3": b3}


def reference_forward(x, p):
    h1 = jnp.maximum(x @ p["w1"] + p["b1"], 0.0)
    h2 = jnp.maximum(h1 @ p["w2"] + p["b2"], 0.0)
    return h2 @ p["w3"] + p["b3"]


if __name__ == "__main__":
    key = jax.random.PRNGKey(0)
    k_params, k_x1, k_x2 = jax.random.split(key, 3)

    n_observations = 4   # CartPole observation dim
    n_actions = 2        # CartPole action dim

    params = init_params(k_params, n_observations, n_actions)

    # Small per-environment-step batch (single-tile grid).
    x_small = jax.random.normal(k_x1, (8, n_observations), jnp.float32)
    out_small = jax.block_until_ready(dqn_cartpole_forward(x_small, params))
    ref_small = reference_forward(x_small, params)
    assert out_small.shape == (8, n_actions)
    assert jnp.allclose(out_small, ref_small, atol=2e-2, rtol=2e-2)

    # Batched replay/eval call: exercises batch padding + 2-step parallel grid.
    x_big = jax.random.normal(k_x2, (300, n_observations), jnp.float32)
    out_big = jax.block_until_ready(dqn_cartpole_forward(x_big, params))
    ref_big = reference_forward(x_big, params)
    assert out_big.shape == (300, n_actions)
    assert jnp.allclose(out_big, ref_big, atol=2e-2, rtol=2e-2)

    # Fused greedy action selection; only require agreement with the f32
    # reference on rows whose top-2 Q gap is clearly larger than bf16 noise.
    act_big = jax.block_until_ready(dqn_cartpole_select_action(x_big, params))
    assert act_big.shape == (300,)
    ref_sorted = jnp.sort(ref_big, axis=-1)
    clear = (ref_sorted[:, -1] - ref_sorted[:, -2]) > 5e-2
    ref_act = jnp.argmax(ref_big, axis=-1).astype(jnp.int32)
    assert bool(jnp.all(jnp.where(clear, act_big == ref_act, True)))

    print("KERNEL_OK")
</pallas_src>

<mosaic_0001>
module attributes {stable_mosaic.version = 11 : i64} {
  func.func @dqn_q_kernel(%arg0: i32, %arg1: memref<8x4xf32, #tpu.memory_space<vmem>>, %arg2: memref<4x128xf32, #tpu.memory_space<vmem>>, %arg3: memref<1x128xf32, #tpu.memory_space<vmem>>, %arg4: memref<128x128xbf16, #tpu.memory_space<vmem>>, %arg5: memref<1x128xf32, #tpu.memory_space<vmem>>, %arg6: memref<128x128xbf16, #tpu.memory_space<vmem>>, %arg7: memref<1x128xf32, #tpu.memory_space<vmem>>, %arg8: memref<8x128xbf16, #tpu.memory_space<vmem>>) attributes {dimension_semantics = [#tpu.dimension_semantics<parallel>], iteration_bounds = array<i64: 1>, scalar_prefetch = 0 : i64, scratch_operands = 0 : i64, tpu.core_type = #tpu.core_type<tc>, window_params = [{transform_indices = @transform_0, window_bounds = array<i64: 8, 4>}, {pipeline_mode = #tpu.pipeline_mode<synchronous>, transform_indices = @transform_1, window_bounds = array<i64: 4, 128>}, {pipeline_mode = #tpu.pipeline_mode<synchronous>, transform_indices = @transform_2, window_bounds = array<i64: 1, 128>}, {pipeline_mode = #tpu.pipeline_mode<synchronous>, transform_indices = @transform_3, window_bounds = array<i64: 128, 128>}, {pipeline_mode = #tpu.pipeline_mode<synchronous>, transform_indices = @transform_4, window_bounds = array<i64: 1, 128>}, {pipeline_mode = #tpu.pipeline_mode<synchronous>, transform_indices = @transform_5, window_bounds = array<i64: 128, 128>}, {pipeline_mode = #tpu.pipeline_mode<synchronous>, transform_indices = @transform_6, window_bounds = array<i64: 1, 128>}, {transform_indices = @transform_7, window_bounds = array<i64: 8, 128>}]} {
    %c0 = arith.constant 0 : index
    %c0_0 = arith.constant 0 : index
    %0 = vector.load %arg1[%c0, %c0_0] : memref<8x4xf32, #tpu.memory_space<vmem>>, vector<8x4xf32>
    %c0_1 = arith.constant 0 : index
    %c0_2 = arith.constant 0 : index
    %1 = vector.load %arg2[%c0_1, %c0_2] : memref<4x128xf32, #tpu.memory_space<vmem>>, vector<4x128xf32>
    %2 = vector.extract_strided_slice %0 {offsets = [0, 0], sizes = [8, 1], strides = [1, 1]} : vector<8x4xf32> to vector<8x1xf32>
    %3 = vector.extract_strided_slice %1 {offsets = [0, 0], sizes = [1, 128], strides = [1, 1]} : vector<4x128xf32> to vector<1x128xf32>
    %4 = vector.broadcast %2 : vector<8x1xf32> to vector<8x128xf32>
    %5 = vector.broadcast %3 : vector<1x128xf32> to vector<8x128xf32>
    %6 = arith.mulf %4, %5 : vector<8x128xf32>
    %c0_3 = arith.constant 0 : index
    %c0_4 = arith.constant 0 : index
    %7 = vector.load %arg3[%c0_3, %c0_4] : memref<1x128xf32, #tpu.memory_space<vmem>>, vector<1x128xf32>
    %8 = vector.broadcast %7 : vector<1x128xf32> to vector<8x128xf32>
    %9 = arith.addf %6, %8 : vector<8x128xf32>
    %10 = vector.extract_strided_slice %0 {offsets = [0, 1], sizes = [8, 1], strides = [1, 1]} : vector<8x4xf32> to vector<8x1xf32>
    %11 = vector.extract_strided_slice %1 {offsets = [1, 0], sizes = [1, 128], strides = [1, 1]} : vector<4x128xf32> to vector<1x128xf32>
    %12 = vector.broadcast %10 : vector<8x1xf32> to vector<8x128xf32>
    %13 = vector.broadcast %11 : vector<1x128xf32> to vector<8x128xf32>
    %14 = arith.mulf %12, %13 : vector<8x128xf32>
    %15 = arith.addf %9, %14 : vector<8x128xf32>
    %16 = vector.extract_strided_slice %0 {offsets = [0, 2], sizes = [8, 1], strides = [1, 1]} : vector<8x4xf32> to vector<8x1xf32>
    %17 = vector.extract_strided_slice %1 {offsets = [2, 0], sizes = [1, 128], strides = [1, 1]} : vector<4x128xf32> to vector<1x128xf32>
    %18 = vector.broadcast %16 : vector<8x1xf32> to vector<8x128xf32>
    %19 = vector.broadcast %17 : vector<1x128xf32> to vector<8x128xf32>
    %20 = arith.mulf %18, %19 : vector<8x128xf32>
    %21 = arith.addf %15, %20 : vector<8x128xf32>
    %22 = vector.extract_strided_slice %0 {offsets = [0, 3], sizes = [8, 1], strides = [1, 1]} : vector<8x4xf32> to vector<8x1xf32>
    %23 = vector.extract_strided_slice %1 {offsets = [3, 0], sizes = [1, 128], strides = [1, 1]} : vector<4x128xf32> to vector<1x128xf32>
    %24 = vector.broadcast %22 : vector<8x1xf32> to vector<8x128xf32>
    %25 = vector.broadcast %23 : vector<1x128xf32> to vector<8x128xf32>
    %26 = arith.mulf %24, %25 : vector<8x128xf32>
    %27 = arith.addf %21, %26 : vector<8x128xf32>
    %cst = arith.constant 0.000000e+00 : f32
    %28 = vector.broadcast %cst : f32 to vector<8x128xf32>
    %29 = arith.maximumf %27, %28 : vector<8x128xf32>
    %30 = arith.truncf %29 : vector<8x128xf32> to vector<8x128xbf16>
    %c0_5 = arith.constant 0 : index
    %c0_6 = arith.constant 0 : index
    %31 = vector.load %arg4[%c0_5, %c0_6] : memref<128x128xbf16, #tpu.memory_space<vmem>>, vector<128x128xbf16>
    %cst_7 = arith.constant dense<0.000000e+00> : vector<8x128xf32>
    %32 = tpu.matmul %30, %31, %cst_7 {dimension_numbers = #tpu.dot_dimension_numbers<[1], [0], [0], [1], [0, 0, 1, 1], [], []>} : vector<8x128xbf16>, vector<128x128xbf16>, vector<8x128xf32> -> vector<8x128xf32>
    %c0_8 = arith.constant 0 : index
    %c0_9 = arith.constant 0 : index
    %33 = vector.load %arg5[%c0_8, %c0_9] : memref<1x128xf32, #tpu.memory_space<vmem>>, vector<1x128xf32>
    %34 = vector.broadcast %33 : vector<1x128xf32> to vector<8x128xf32>
    %35 = arith.addf %32, %34 : vector<8x128xf32>
    %cst_10 = arith.constant 0.000000e+00 : f32
    %36 = vector.broadcast %cst_10 : f32 to vector<8x128xf32>
    %37 = arith.maximumf %35, %36 : vector<8x128xf32>
    %38 = arith.truncf %37 : vector<8x128xf32> to vector<8x128xbf16>
    %c0_11 = arith.constant 0 : index
    %c0_12 = arith.constant 0 : index
    %39 = vector.load %arg6[%c0_11, %c0_12] : memref<128x128xbf16, #tpu.memory_space<vmem>>, vector<128x128xbf16>
    %cst_13 = arith.constant dense<0.000000e+00> : vector<8x128xf32>
    %40 = tpu.matmul %38, %39, %cst_13 {dimension_numbers = #tpu.dot_dimension_numbers<[1], [0], [0], [1], [0, 0, 1, 1], [], []>} : vector<8x128xbf16>, vector<128x128xbf16>, vector<8x128xf32> -> vector<8x128xf32>
    %c0_14 = arith.constant 0 : index
    %c0_15 = arith.constant 0 : index
    %41 = vector.load %arg7[%c0_14, %c0_15] : memref<1x128xf32, #tpu.memory_space<vmem>>, vector<1x128xf32>
    %42 = vector.broadcast %41 : vector<1x128xf32> to vector<8x128xf32>
    %43 = arith.addf %40, %42 : vector<8x128xf32>
    %44 = arith.truncf %43 : vector<8x128xf32> to vector<8x128xbf16>
    %c0_16 = arith.constant 0 : index
    %c0_17 = arith.constant 0 : index
    %45 = vector.load %arg8[%c0_16, %c0_17] : memref<8x128xbf16, #tpu.memory_space<vmem>>, vector<8x128xbf16>
    tpu.vector_store %arg8[%c0_16, %c0_17], %44 {strides = array<i32>} : memref<8x128xbf16, #tpu.memory_space<vmem>>, vector<8x128xbf16>,
    return
  }
  func.func @transform_0(%arg0: i32) -> (i32, i32) {
    %c0_i32 = arith.constant 0 : i32
    %c0_i32_0 = arith.constant 0 : i32
    return %arg0, %c0_i32 : i32, i32
  }
  func.func @transform_1(%arg0: i32) -> (i32, i32) {
    %c0_i32 = arith.constant 0 : i32
    %c0_i32_0 = arith.constant 0 : i32
    %c0_i32_1 = arith.constant 0 : i32
    return %c0_i32, %c0_i32_0 : i32, i32
  }
  func.func @transform_2(%arg0: i32) -> (i32, i32) {
    %c0_i32 = arith.constant 0 : i32
    %c0_i32_0 = arith.constant 0 : i32
    %c0_i32_1 = arith.constant 0 : i32
    return %c0_i32, %c0_i32_0 : i32, i32
  }
  func.func @transform_3(%arg0: i32) -> (i32, i32) {
    %c0_i32 = arith.constant 0 : i32
    %c0_i32_0 = arith.constant 0 : i32
    %c0_i32_1 = arith.constant 0 : i32
    return %c0_i32, %c0_i32_0 : i32, i32
  }
  func.func @transform_4(%arg0: i32) -> (i32, i32) {
    %c0_i32 = arith.constant 0 : i32
    %c0_i32_0 = arith.constant 0 : i32
    %c0_i32_1 = arith.constant 0 : i32
    return %c0_i32, %c0_i32_0 : i32, i32
  }
  func.func @transform_5(%arg0: i32) -> (i32, i32) {
    %c0_i32 = arith.constant 0 : i32
    %c0_i32_0 = arith.constant 0 : i32
    %c0_i32_1 = arith.constant 0 : i32
    return %c0_i32, %c0_i32_0 : i32, i32
  }
  func.func @transform_6(%arg0: i32) -> (i32, i32) {
    %c0_i32 = arith.constant 0 : i32
    %c0_i32_0 = arith.constant 0 : i32
    %c0_i32_1 = arith.constant 0 : i32
    return %c0_i32, %c0_i32_0 : i32, i32
  }
  func.func @transform_7(%arg0: i32) -> (i32, i32) {
    %c0_i32 = arith.constant 0 : i32
    %c0_i32_0 = arith.constant 0 : i32
    return %arg0, %c0_i32 : i32, i32
  }
}

</mosaic_0001>

<bundles_post_ra>
// kernel: tpu_custom_call.1
= control target key start
LH: loop header
LB: loop body
LE: loop exit
PB: predicated region body
PF: predicated region fallthrough
CT: control target
= control target key end

     0   :  { %12 = vsyncpa [#allocation3], 0  ;;  %s528_s0 = inlined_call_operand.vmem [shape: f32[8,4], index: 0, kind: input, shape index: {}]   ;;  %s529_s1 = inlined_call_operand.vmem [shape: f32[4,128], index: 1, kind: input, shape index: {}]   ;;  %s530_s2 = inlined_call_operand.vmem [shape: f32[1,128], index: 2, kind: input, shape index: {}]   ;;  %s531_s3 = inlined_call_operand.hbm [shape: bf16[128,128], index: 3, kind: input, shape index: {}]   ;;  %s532_s4 = inlined_call_operand.vmem [shape: f32[1,128], index: 4, kind: input, shape index: {}]   ;;  %s533_s5 = inlined_call_operand.hbm [shape: bf16[128,128], index: 5, kind: input, shape index: {}]   ;;  %s534_s6 = inlined_call_operand.vmem [shape: f32[1,128], index: 6, kind: input, shape index: {}]   ;;  %s535_s7 = inlined_call_operand.hbm [shape: bf16[8,128], index: 7, kind: output, shape index: {}]  }
   0x1   :  { %13 = vsyncpa [#allocation6], 0 }
   0x2   :  { %14 = vsyncpa [#allocation4], 0  ;;  %s25_s26 = sshll.u32 %s531_s3, 4  ;;  %s455_s27 = smov [#allocation2]   ;;  %s26_s26 = int_to_ptr.hbm [resolvable:$true] %s25_s26 }
   0x3   :  { %s27_s28 = sshll.u32 %s455_s27, 4  ;;  %s40_s8 = sshll.u32 %s533_s5, 4  ;;  %s28_s28 = int_to_ptr.vmem [resolvable:$true] %s27_s28  ;;  %s41_s8 = int_to_ptr.hbm [resolvable:$true] %s40_s8 }
   0x4   :  { %s456_s9 = smov 64   ;;  %s457_s10 = smov 4  }
   0x5   :  { %33 = dma.hbm_to_vmem [thread:$0]  %s26_s26, 1024, %s28_s28, [#allocation3], %s456_s9, %s456_s9, %s457_s10  }
   0x6   :  { %s458_s11 = smov [#allocation5]  }
   0x7   :  { %s42_s12 = sshll.u32 %s458_s11, 4  ;;  %s43_s12 = int_to_ptr.vmem [resolvable:$true] %s42_s12 }
   0x8   :  { %48 = dma.hbm_to_vmem [thread:$0]  %s41_s8, 1024, %s43_s12, [#allocation6], %s456_s9, %s456_s9, %s457_s10  }
   0x9   :  { %449 = dma.done.wait [#allocation3], 1024  }
   0xa   :  { %450 = vsyncadd [#allocation3], 4294966272 }
   0xb   :  { %451 = dma.done.wait [#allocation6], 1024  }
   0xc   :  { %452 = vsyncadd [#allocation6], 4294966272  ;;  %v459_v0 = vmov 0   ;;  %v460_v1 = vmov 2   ;;  %v59_v2 = vld [vmem:[%s528_s0] sm:$0xff]  ;;  %v351_v3 = vld [vmem:[#allocation2 + $0x38] sm:$0xff] }
   0xd   :  { %369 = vset.pattern.permute.xlu0 %v459_v0  ;;  %371 = vset.pattern.permute.xlu1 %v460_v1  ;;  %v350_v4 = vld [vmem:[#allocation2 + $0x30] sm:$0xff]  ;;  %v349_v5 = vld [vmem:[#allocation2 + $0x28] sm:$0xff]  ;;  %v461_v6 = vmov 1   ;;  %v462_v7 = vmov 3   ;;  %v348_v8 = vld [vmem:[#allocation2 + $0x20] sm:$0xff]  ;;  %s463_s18 = smov [#allocation7]  }
   0xe   :  { %63 = vperm.xlu0 %369, %v59_v2   ;;  %81 = vperm.xlu1 %371, %v59_v2   ;;  %v347_v9 = vld [vmem:[#allocation2 + $0x18] sm:$0xff]  ;;  %v346_v10 = vld [vmem:[#allocation2 + $0x10] sm:$0xff]  ;;  %v345_v11 = vld [vmem:[#allocation2 + $0x8] sm:$0xff]  ;;  %s267_s19 = sshll.u32 %s463_s18, 4  ;;  %s269_s22 = sshll.u32 %s535_s7, 4  ;;  %s268_s19 = int_to_ptr.vmem [resolvable:$true] %s267_s19  ;;  %s270_s22 = int_to_ptr.hbm [resolvable:$true] %s269_s22 }
   0xf   :  { %164 = vmatpush.bf16.msra.mxu0 %v351_v3  ;;  %v344_v12 = vld [vmem:[#allocation2] sm:$0xff]  ;;  %v359_v13 = vld [vmem:[#allocation5 + $0x38] sm:$0xff]  ;;  %v358_v14 = vld [vmem:[#allocation5 + $0x30] sm:$0xff] }
  0x10   :  { %247 = vmatpush.bf16.msra.mxu1 %v359_v13  ;;  %v357_v15 = vld [vmem:[#allocation5 + $0x28] sm:$0xff]  ;;  %v60_v16 = vld [vmem:[%s529_s1] sm:$0xf]  ;;  %v355_v21 = vld [vmem:[#allocation5 + $0x18] sm:$0xff] }
  0x11   :  { %v356_v19 = vld [vmem:[#allocation5 + $0x20] sm:$0xff]  ;;  %v66_v20 = vperm.slane %v60_v16, 0  ;;  %v77_v24 = vperm.slane %v60_v16, 1  ;;  %v84_v25 = vperm.slane %v60_v16, 2  ;;  %v91_v26 = vperm.slane %v60_v16, 3  ;;  %v354_v27 = vld [vmem:[#allocation5 + $0x10] sm:$0xff] }
  0x12   :  { %v374_v22 = vld [vmem:[%s530_s2] ss:$0 sm:$0xff]  ;;  %v353_v39 = vld [vmem:[#allocation5 + $0x8] sm:$0xff] }
  0x13   :  { %165 = vmatpush.bf16.msra.mxu0 %v350_v4  ;;  %v352_v40 = vld [vmem:[#allocation5] sm:$0xff] }
  0x14   :  { %248 = vmatpush.bf16.msra.mxu1 %v358_v14  ;;  %v375_v41 = vld [vmem:[%s532_s4] ss:$0 sm:$0xff] }
  0x15   :  { %v376_v47 = vld [vmem:[%s534_s6] ss:$0 sm:$0xff] }
  0x16   :  { %370 = vset.pattern.permute.xlu0 %v461_v6  ;;  %372 = vset.pattern.permute.xlu1 %v462_v7 }
  0x17   :  { %74 = vperm.xlu0 %370, %v59_v2   ;;  %88 = vperm.xlu1 %372, %v59_v2  }
  0x18   :  { %166 = vmatpush.bf16.msra.mxu0 %v349_v5  ;;  %249 = vmatpush.bf16.msra.mxu1 %v357_v15 }
  0x1c   :  { %167 = vmatpush.bf16.msra.mxu0 %v348_v8  ;;  %250 = vmatpush.bf16.msra.mxu1 %v356_v19 }
  0x1f   :  { %373 = vset.pattern.permute.xlu0 %v462_v7 }
  0x20   :  { %168 = vmatpush.bf16.msra.mxu0 %v347_v9  ;;  %251 = vmatpush.bf16.msra.mxu1 %v355_v21 }
  0x24   :  { %169 = vmatpush.bf16.msra.mxu0 %v346_v10  ;;  %252 = vmatpush.bf16.msra.mxu1 %v354_v27 }
  0x28   :  { %170 = vmatpush.bf16.msra.mxu0 %v345_v11  ;;  %253 = vmatpush.bf16.msra.mxu1 %v353_v39 }
  0x2c   :  { %171 = vmatpush.bf16.msra.mxu0 %v344_v12  ;;  %254 = vmatpush.bf16.msra.mxu1 %v352_v40 }
  0x80   :  { %v64_v17 = vpop.permute.xlu0 %63  ;;  %v82_v18 = vpop.permute.xlu1 %81 }
  0x81   :  { %v67_v23 = vmul.f32 %v66_v20, %v64_v17  ;;  %v85_v32 = vmul.f32 %v84_v25, %v82_v18 }
  0x83   :  { %v72_v30 = vadd.f32 %v374_v22, %v67_v23 }
  0x89   :  { %v75_v28 = vpop.permute.xlu0 %74  ;;  %v89_v29 = vpop.permute.xlu1 %88 }
  0x8a   :  { %v78_v31 = vmul.f32 %v77_v24, %v75_v28  ;;  %v92_v34 = vmul.f32 %v91_v26, %v89_v29 }
  0x8c   :  { %v79_v33 = vadd.f32 %v78_v31, %v72_v30 }
  0x8e   :  { %v86_v35 = vadd.f32 %v85_v32, %v79_v33 }
  0x90   :  { %v93_v36 = vadd.f32 %v92_v34, %v86_v35 }
  0x92   :  { %v94_v37 = vmax.f32 %v93_v36, 0.0 }
  0x94   :  { %v95_v38 = vpack.c.bf16 %v94_v37, %v94_v37 }
  0x96   :  { %172 = vmatmul.bf16.vlgmr.msra.gmra.mxu0 %v95_v38 }
 0x113   :  { %v173_v42 = vpop.f32.mrf.mxu0 }
 0x114   :  { %v174_v43 = vadd.f32 %v375_v41, %v173_v42 }
 0x116   :  { %v177_v44 = vmax.f32 %v174_v43, 0.0 }
 0x118   :  { %v178_v45 = vpack.c.bf16 %v177_v44, %v177_v44 }
 0x11a   :  { %255 = vmatmul.bf16.vlgmr.msra.gmra.mxu1 %v178_v45 }
 0x11b   :  { %v175_v46 = vpop.f32.mrf.mxu0 }
 0x197   :  { %v256_v48 = vpop.f32.mrf.mxu1 }
 0x198   :  { %v257_v49 = vadd.f32 %v376_v47, %v256_v48 }
 0x19a   :  { %v260_v50 = vpack.c.bf16 %v257_v49, %v257_v49 }
 0x19c   :  { %261 = vst [vmem:[#allocation7] sm:$0xf] %v260_v50 }
 0x19d   :  { %272 = dma.vmem_to_hbm [thread:$0]  %s268_s19, 64, %s270_s22, [#allocation4]  }
 0x19f   :  { %v258_v51 = vpop.f32.mrf.mxu1 }
 0x1a0   :  { %453 = dma.done.wait [#allocation4], 64  }
 0x1a1   :  { %454 = vsyncadd [#allocation4], 4294967232 }
 0x1a2   :  { %277 = vsyncpa [#allocation3], 1 }
 0x1a3   :  { %278 = vsyncpa [#allocation6], 1 }
 0x1a4   :  { %279 = vsyncpa [#allocation4], 1 }

</bundles_post_ra>
